<compile_context>
chip_gen: v6e
topology: v6e:2x2x1
jax: 0.10.0
libtpu: 0.0.40
codegen_flags: <defaults>
</compile_context>

<pallas_src>
import jax
import jax.numpy as jnp
from jax.experimental import pallas as pl
from jax.experimental.pallas import tpu as pltpu


def _drop_path_kernel(x_ref, s_ref, o_ref):
    # x_ref: (tb, tf) in x.dtype; s_ref: (tb, 1) f32 per-sample scale
    # (0.0 or 1/keep_prob).  Cast the tiny scale column once per tile and
    # multiply in the native dtype, broadcasting along the lane axis.
    o_ref[...] = x_ref[...] * s_ref[...].astype(o_ref.dtype)


def _largest_divisor_tile(dim, unit, cap):
    """Largest divisor of `dim` that is a multiple of `unit` and <= cap.

    Falls back to the full dim (always a legal block extent)."""
    if dim <= cap:
        return dim
    t = (cap // unit) * unit
    while t >= unit:
        if dim % t == 0:
            return t
        t -= unit
    return dim


def _next_smaller_divisor(n, unit):
    """Largest divisor of `n` that is a multiple of `unit` and < n (or None)."""
    t = ((n - 1) // unit) * unit
    while t >= unit:
        if n % t == 0:
            return t
        t -= unit
    return None


def drop_path(x, dropout_p=0.0, training=False, *, key=None, tb=None, tf=None):
    """DropPath forward. Identity when dropout_p == 0 or not training."""
    if dropout_p == 0.0 or not training:
        return x  # module returns the input unchanged in eval / p=0
    keep_prob = 1.0 - float(dropout_p)

    B = x.shape[0]
    x2d = x.reshape(B, -1)
    F = x2d.shape[1]

    # Per-sample Bernoulli mask, computed once (matches torch's
    # floor(keep_prob + U[0,1))), pre-scaled by 1/keep_prob so the kernel is
    # a single broadcasted multiply.  Not bit-identical to torch's RNG stream.
    if key is None:
        key = jax.random.PRNGKey(0)
    u = jax.random.uniform(key, (B, 1), dtype=jnp.float32)
    scale = jnp.floor(keep_prob + u) * jnp.float32(1.0 / keep_prob)  # (B, 1)

    itemsize = jnp.dtype(x.dtype).itemsize
    unit = max(8, 32 // itemsize)  # sublane packing: 8 f32 / 16 bf16 / 32 int8

    # Large, lane-dense tiles: feature axis -> lanes, batch axis -> sublanes.
    if tf is None:
        tf = _largest_divisor_tile(F, 128, 4096)
    if tb is None:
        tb = _largest_divisor_tile(B, unit, 1024 if itemsize < 4 else 512)
    assert B % tb == 0 and F % tf == 0, "tile must evenly divide (B, F)"

    budget = 48 << 20  # safe even on v7x (64 MiB physical VMEM per TC)

    def footprint(tb_, tf_):
        # x tile + out tile, each double-buffered, plus scale/headroom.
        return 4 * tb_ * tf_ * itemsize + (2 << 20)

    # Harden the full-dim fallback: shrink tb until the pipelined footprint
    # fits the budget (e.g. awkward large F with no multiple-of-128 divisor).
    while footprint(tb, tf) > budget and tb > unit:
        nxt = _next_smaller_divisor(tb, unit)
        if nxt is None:
            break
        tb = nxt

    # v7x has 2 TensorCores: prefer >= 2 blocks on the (parallel) batch axis.
    if B // tb == 1 and F // tf == 1 and tb > unit:
        nxt = _next_smaller_divisor(tb, unit)
        if nxt is not None:
            tb = nxt

    grid = (B // tb, F // tf)
    vmem_bytes = int(min(max(footprint(tb, tf), 8 << 20), budget))

    out = pl.pallas_call(
        _drop_path_kernel,
        out_shape=jax.ShapeDtypeStruct((B, F), x.dtype),
        grid=grid,
        in_specs=[pl.BlockSpec((tb, tf), lambda i, j: (i, j)),
                  pl.BlockSpec((tb, 1), lambda i, j: (i, 0))],
        out_specs=pl.BlockSpec((tb, tf), lambda i, j: (i, j)),
        compiler_params=pltpu.CompilerParams(
            dimension_semantics=("parallel", "parallel"),
            vmem_limit_bytes=vmem_bytes),
    )(x2d, scale)
    return out.reshape(x.shape)


if __name__ == "__main__":
    key = jax.random.PRNGKey(0)
    k1, k2, km1, km2, km3 = jax.random.split(key, 5)

    # Small shape consistent with the module (x: (B, C, H, W)).
    x = jax.random.normal(k1, (2, 4, 16, 16), dtype=jnp.float32)
    p = 0.25
    keep_prob = 1.0 - p

    # Eval-mode and p=0 paths are identity (module semantics).
    assert jnp.array_equal(drop_path(x, p, training=False), x)
    assert jnp.array_equal(drop_path(x, 0.0, training=True), x)

    # Training path: each sample is either all-zero or exactly x / keep_prob.
    out = jax.block_until_ready(drop_path(x, p, training=True, key=km1))
    assert out.shape == x.shape and out.dtype == x.dtype
    for b in range(x.shape[0]):
        kept = bool(jnp.allclose(out[b], x[b] / keep_prob, atol=1e-5, rtol=1e-5))
        dropped = bool(jnp.allclose(out[b], 0.0))
        assert kept or dropped, f"sample {b}: not a valid DropPath output"

    # Multi-tile check (grid = (2, 4)): the per-sample mask must be identical
    # across feature tiles and independent per batch row.
    x2 = jax.random.normal(k2, (16, 4, 16, 16), dtype=jnp.float32)
    out2 = jax.block_until_ready(
        drop_path(x2, p, training=True, key=km2, tb=8, tf=256))
    for b in range(x2.shape[0]):
        kept = bool(jnp.allclose(out2[b], x2[b] / keep_prob, atol=1e-5, rtol=1e-5))
        dropped = bool(jnp.allclose(out2[b], 0.0))
        assert kept or dropped, f"sample {b}: mask inconsistent across tiles"

    # bf16 path: multiply happens in native dtype (no f32 round-trip).
    x3 = x2.astype(jnp.bfloat16)
    out3 = jax.block_until_ready(drop_path(x3, p, training=True, key=km3))
    assert out3.dtype == jnp.bfloat16
    for b in range(x3.shape[0]):
        ref = (x3[b].astype(jnp.float32) / keep_prob)
        kept = bool(jnp.allclose(out3[b].astype(jnp.float32), ref,
                                 atol=1e-1, rtol=2e-2))
        dropped = bool(jnp.allclose(out3[b].astype(jnp.float32), 0.0))
        assert kept or dropped, f"bf16 sample {b}: not a valid DropPath output"

    print("KERNEL_OK")
</pallas_src>

<mosaic_0001>
module attributes {stable_mosaic.version = 11 : i64} {
  func.func @_drop_path_kernel(%arg0: i32, %arg1: i32, %arg2: memref<2x1024xf32, #tpu.memory_space<vmem>>, %arg3: memref<2x1xf32, #tpu.memory_space<vmem>>, %arg4: memref<2x1024xf32, #tpu.memory_space<vmem>>) attributes {dimension_semantics = [#tpu.dimension_semantics<parallel>, #tpu.dimension_semantics<parallel>], iteration_bounds = array<i64: 1, 1>, scalar_prefetch = 0 : i64, scratch_operands = 0 : i64, tpu.core_type = #tpu.core_type<tc>, window_params = [{transform_indices = @transform_0, window_bounds = array<i64: 2, 1024>}, {transform_indices = @transform_1, window_bounds = array<i64: 2, 1>}, {transform_indices = @transform_2, window_bounds = array<i64: 2, 1024>}]} {
    %c0 = arith.constant 0 : index
    %c0_0 = arith.constant 0 : index
    %0 = vector.load %arg2[%c0, %c0_0] : memref<2x1024xf32, #tpu.memory_space<vmem>>, vector<2x1024xf32>
    %c0_1 = arith.constant 0 : index
    %c0_2 = arith.constant 0 : index
    %1 = vector.load %arg3[%c0_1, %c0_2] : memref<2x1xf32, #tpu.memory_space<vmem>>, vector<2x1xf32>
    %2 = vector.broadcast %1 : vector<2x1xf32> to vector<2x1024xf32>
    %3 = arith.mulf %0, %2 : vector<2x1024xf32>
    %c0_3 = arith.constant 0 : index
    %c0_4 = arith.constant 0 : index
    %4 = vector.load %arg4[%c0_3, %c0_4] : memref<2x1024xf32, #tpu.memory_space<vmem>>, vector<2x1024xf32>
    tpu.vector_store %arg4[%c0_3, %c0_4], %3 {strides = array<i32>} : memref<2x1024xf32, #tpu.memory_space<vmem>>, vector<2x1024xf32>,
    return
  }
  func.func @transform_0(%arg0: i32, %arg1: i32) -> (i32, i32) {
    %c0_i32 = arith.constant 0 : i32
    return %arg0, %arg1 : i32, i32
  }
  func.func @transform_1(%arg0: i32, %arg1: i32) -> (i32, i32) {
    %c0_i32 = arith.constant 0 : i32
    %c0_i32_0 = arith.constant 0 : i32
    return %arg0, %c0_i32 : i32, i32
  }
  func.func @transform_2(%arg0: i32, %arg1: i32) -> (i32, i32) {
    %c0_i32 = arith.constant 0 : i32
    return %arg0, %arg1 : i32, i32
  }
}

</mosaic_0001>

<bundles_post_ra>
// kernel: tpu_custom_call.1
= control target key start
LH: loop header
LB: loop body
LE: loop exit
PB: predicated region body
PF: predicated region fallthrough
CT: control target
= control target key end

     0   :  { %7 = vsyncpa [#allocation3], 0  ;;  %s135_s0 = inlined_call_operand.hbm [shape: f32[2,1024], index: 0, kind: input, shape index: {}]   ;;  %s136_s1 = inlined_call_operand.vmem [shape: f32[2,1], index: 1, kind: input, shape index: {}]   ;;  %s137_s2 = inlined_call_operand.hbm [shape: f32[2,1024], index: 2, kind: output, shape index: {}]  }
   0x1   :  { %8 = vsyncpa [#allocation4], 0  ;;  %s107_s9 = smov [#allocation2]  }
   0x2   :  { %s15_s10 = sshll.u32 %s107_s9, 4  ;;  %s16_s10 = int_to_ptr.vmem [resolvable:$true] %s15_s10 }
   0x3   :  { %s71_s11 = scalar_lea.vmem %s16_s10, 256  ;;  %p76_p1 = scmp.lt.s32.totalorder %s16_s10, %s16_s10 }
   0x4   :  { %p72_p0 = scmp.ne.s32.totalorder %s16_s10, %s71_s11  ;;  %p77_p2 = scmp.lt.s32.totalorder %s71_s11, %s71_s11 }
   0x6   :  { %p78_p3 = por %p77_p2, %p76_p1 }
   0x8   :  { %p79_p4 = pnand %p78_p3, %p72_p0 }
   0xa   :  { %82 = shalt.err (!%p79_p4)
}
   0xb   :  { %18 = dma.hbm_to_vmem [thread:$0]  %s135_s0, 256, %s16_s10, [#allocation3]  }
   0xc   :  { %103 = dma.done.wait [#allocation3], 256  }
   0xd   :  { %104 = vsyncadd [#allocation3], 4294967040  ;;  %v108_v0 = vmov 0   ;;  %v26_v1 = vld [vmem:[%s136_s1] sm:$0x3]  ;;  %v34_v4 = vlaneseq  ;;  %v25_v10 = vld [vmem:[#allocation2 + $0x8] sm:$0xff] }
   0xe   :  { %62 = vset.pattern.permute.xlu0 %v108_v0  ;;  %v109_v2 = vmov 269488144   ;;  %v24_v9 = vld [vmem:[#allocation2] sm:$0xff]  ;;  %s110_s16 = smov [#allocation5]  }
   0xf   :  { %29 = vperm.xlu0 %62, %v26_v1   ;;  %v32_v3 = vunpack.c.l.s4 %v109_v2  ;;  %v35_v6 = vshrl.u32 %v34_v4, 7  ;;  %s49_s0 = sshll.u32 %s110_s16, 4  ;;  %s50_s0 = int_to_ptr.vmem [resolvable:$true] %s49_s0 }
  0x10   :  { %s83_s17 = scalar_lea.vmem %s50_s0, 256  ;;  %p88_p6 = scmp.lt.s32.totalorder %s50_s0, %s50_s0 }
  0x11   :  { %v33_v5 = vunpack.c.0.s8 %v32_v3  ;;  %p84_p5 = scmp.ne.s32.totalorder %s50_s0, %s83_s17  ;;  %p89_p7 = scmp.lt.s32.totalorder %s83_s17, %s83_s17 }
  0x13   :  { %v36_v7 = vsub.s32 %v33_v5, %v35_v6  ;;  %p90_p8 = por %p89_p7, %p88_p6 }
  0x15   :  { %p91_p9 = pnand %p90_p8, %p84_p5 }
  0x8a   :  { %v30_v8 = vpop.permute.xlu0 %29 }
  0x8b   :  { %v37_v11 = vrot.slane %v30_v8, %v36_v7 }
  0x8d   :  { %v39_v12 = vmul.f32 %v37_v11, %v24_v9  ;;  %v40_v13 = vmul.f32 %v37_v11, %v25_v10 }
  0x8f   :  { %41 = vst [vmem:[#allocation5] sm:$0xff] %v39_v12  ;;  %42 = vst [vmem:[#allocation5 + $0x8] sm:$0xff] %v40_v13 }
  0x90   :  { %94 = shalt.err (!%p91_p9)
}
  0x91   :  { %52 = dma.vmem_to_hbm [thread:$0]  %s50_s0, 256, %s137_s2, [#allocation4]  }
  0x92   :  { %105 = dma.done.wait [#allocation4], 256  }
  0x93   :  { %106 = vsyncadd [#allocation4], 4294967040 }
  0x94   :  { %56 = vsyncpa [#allocation3], 1 }
  0x95   :  { %57 = vsyncpa [#allocation4], 1 }

</bundles_post_ra>
